<compile_context>
chip_gen: v5e
topology: v5e:2x2
jax: 0.10.0
libtpu: 0.0.40
codegen_flags: <defaults>
</compile_context>

<pallas_src>
import jax
import jax.numpy as jnp
from jax.experimental import pallas as pl
from jax.experimental.pallas import tpu as pltpu


# Conservative per-kernel budget for the double-buffered blocks
# (2 inputs x 2 pipeline buffers + lane-padded output).  32 MiB fits inside
# v7x's 64 MiB per-TensorCore VMEM and is far past the measured tile-size knee
# (~512-1024 rows) on v5e/v6e.
_VMEM_BLOCK_BUDGET = 32 * 1024 * 1024
_VMEM_LIMIT_BYTES = 48 * 1024 * 1024
_MAX_TILE_M = 8192
# Below this many bytes per input, XLA fusion of the tiny op beats a kernel
# launch + pipeline prologue.
_SMALL_INPUT_BYTES = 256 * 1024


def _per_row_block_bytes(D, itemsize):
    d_lanes = pl.cdiv(D, 128) * 128                    # lane padding in VMEM
    # 2 inputs x 2 buffers of (tile, D) + 2 buffers of lane-padded (tile, 1) f32
    return 4 * d_lanes * itemsize + 2 * 128 * 4


def _choose_tile_m(M, D, itemsize):
    """Largest 128-aligned row tile fitting the double-buffered VMEM budget."""
    per_row_bytes = _per_row_block_bytes(D, itemsize)
    tile = _VMEM_BLOCK_BUDGET // per_row_bytes
    tile = min(tile, _MAX_TILE_M)
    m_ceil = pl.cdiv(M, 128) * 128
    tile = min(tile, m_ceil)
    # Prefer >= 2 row tiles so the "parallel" grid gives both v7x TCs work.
    if tile >= m_ceil and tile > 128:
        tile = pl.cdiv(m_ceil, 2)
    return max(128, (tile // 128) * 128)


def _row_dot_kernel(r_ref, e_ref, o_ref):
    # r_ref, e_ref: (tile_m, D) VMEM tiles in their native dtype (f32 or bf16).
    # o_ref: (tile_m, 1) per-row dot products, accumulated in f32.
    prod = r_ref[...].astype(jnp.float32) * e_ref[...].astype(jnp.float32)
    o_ref[...] = jnp.sum(prod, axis=-1, keepdims=True)


def _row_dots_pallas(r, e, tile_m):
    M, D = r.shape
    grid = (pl.cdiv(M, tile_m),)   # partial last block handled by Pallas masking
    out = pl.pallas_call(
        _row_dot_kernel,
        out_shape=jax.ShapeDtypeStruct((M, 1), jnp.float32),
        grid_spec=pltpu.PrefetchScalarGridSpec(
            num_scalar_prefetch=0,
            grid=grid,
            in_specs=[
                pl.BlockSpec((tile_m, D), lambda i: (i, 0)),
                pl.BlockSpec((tile_m, D), lambda i: (i, 0)),
            ],
            out_specs=pl.BlockSpec((tile_m, 1), lambda i: (i, 0)),
        ),
        compiler_params=pltpu.CompilerParams(
            dimension_semantics=("parallel",),
            vmem_limit_bytes=_VMEM_LIMIT_BYTES,
        ),
    )(r, e)
    return out.reshape(-1)


def reduce_loss(recon, embed):
    """Pallas implementation of ReduceLoss.forward(recon, embed)."""
    assert recon.shape == embed.shape, (recon.shape, embed.shape)
    D = recon.shape[-1]
    r = recon.reshape(-1, D)
    e = embed.reshape(-1, D)

    # Keep bf16/f32 in HBM as-is (upcast happens in-kernel, halving HBM reads
    # for bf16); anything else is promoted to f32 in the wrapper.
    native = (jnp.dtype(jnp.float32), jnp.dtype(jnp.bfloat16))
    if r.dtype not in native:
        r = r.astype(jnp.float32)
    if e.dtype not in native:
        e = e.astype(jnp.float32)

    M = r.shape[0]
    itemsize = max(r.dtype.itemsize, e.dtype.itemsize)

    too_small = M * D * itemsize < _SMALL_INPUT_BYTES
    # Degenerate huge-D: even a 128-row block would overflow the VMEM budget.
    too_wide = 128 * _per_row_block_bytes(D, itemsize) > _VMEM_BLOCK_BUDGET

    if too_small or too_wide:
        # Tiny input (launch overhead dwarfs the work) or huge-D fallback.
        dots = (r.astype(jnp.float32) * e.astype(jnp.float32)).sum(-1)
    else:
        tile_m = _choose_tile_m(M, D, itemsize)
        dots = _row_dots_pallas(r, e, tile_m)

    # TODO(synk): arccos + mean over the M per-row scalars stays in plain JAX
    # (O(M) glue; acos has no Mosaic lowering).  No clamp to [-1, 1] is added,
    # matching PyTorch semantics exactly (fp-rounding NaNs behave the same).
    return jnp.arccos(dots).mean()


if __name__ == "__main__":
    key = jax.random.PRNGKey(0)

    def make_unit(k, shape, dtype):
        x = jax.random.normal(k, shape, dtype=jnp.float32)
        x = x / jnp.linalg.norm(x, axis=-1, keepdims=True)
        return x.astype(dtype)

    def ref_loss(recon, embed):
        r = recon.astype(jnp.float32)
        e = embed.astype(jnp.float32)
        return jnp.arccos((e * r).sum(-1)).mean()

    # CLIP-style embeddings (B, N, D), unit-normalized along D so the per-row
    # dot products land in [-1, 1] (valid arccos domain).
    cases = [
        ("small-bypass", (2, 64, 32), jnp.float32),     # tiny: plain-JAX bypass
        ("kernel-f32", (2, 1024, 128), jnp.float32),    # pallas path, 2 tiles
        ("kernel-bf16", (2, 1024, 128), jnp.bfloat16),  # bf16 kept native in HBM
        ("kernel-ragged", (3, 341, 128), jnp.float32),  # M=1023: partial last block
    ]

    for name, shape, dtype in cases:
        key, k_r, k_e = jax.random.split(key, 3)
        recon = make_unit(k_r, shape, dtype)
        embed = make_unit(k_e, shape, dtype)

        loss = reduce_loss(recon, embed)
        jax.block_until_ready(loss)

        expected = ref_loss(recon, embed)
        assert jnp.allclose(loss, expected, rtol=1e-5, atol=1e-5), (
            name, loss, expected)

    print("KERNEL_OK")
</pallas_src>

<mosaic_0001>
module attributes {stable_mosaic.version = 11 : i64} {
  func.func @_row_dot_kernel(%arg0: i32, %arg1: memref<1024x128xf32, #tpu.memory_space<vmem>>, %arg2: memref<1024x128xf32, #tpu.memory_space<vmem>>, %arg3: memref<1024x1xf32, #tpu.memory_space<vmem>>) attributes {dimension_semantics = [#tpu.dimension_semantics<parallel>], iteration_bounds = array<i64: 2>, scalar_prefetch = 0 : i64, scratch_operands = 0 : i64, tpu.core_type = #tpu.core_type<tc>, window_params = [{transform_indices = @transform_0, window_bounds = array<i64: 1024, 128>}, {transform_indices = @transform_1, window_bounds = array<i64: 1024, 128>}, {transform_indices = @transform_2, window_bounds = array<i64: 1024, 1>}]} {
    %c0 = arith.constant 0 : index
    %c0_0 = arith.constant 0 : index
    %0 = vector.load %arg1[%c0, %c0_0] : memref<1024x128xf32, #tpu.memory_space<vmem>>, vector<1024x128xf32>
    %c0_1 = arith.constant 0 : index
    %c0_2 = arith.constant 0 : index
    %1 = vector.load %arg2[%c0_1, %c0_2] : memref<1024x128xf32, #tpu.memory_space<vmem>>, vector<1024x128xf32>
    %2 = arith.mulf %0, %1 : vector<1024x128xf32>
    %cst = arith.constant dense<0.000000e+00> : vector<1024xf32>
    %3 = vector.multi_reduction <add>, %2, %cst [1] : vector<1024x128xf32> to vector<1024xf32>
    %4 = vector.shape_cast %3 : vector<1024xf32> to vector<1024x1xf32>
    %c0_3 = arith.constant 0 : index
    %c0_4 = arith.constant 0 : index
    %5 = vector.load %arg3[%c0_3, %c0_4] : memref<1024x1xf32, #tpu.memory_space<vmem>>, vector<1024x1xf32>
    tpu.vector_store %arg3[%c0_3, %c0_4], %4 {strides = array<i32>} : memref<1024x1xf32, #tpu.memory_space<vmem>>, vector<1024x1xf32>,
    return
  }
  func.func @transform_0(%arg0: i32) -> (i32, i32) {
    %c0_i32 = arith.constant 0 : i32
    %c0_i32_0 = arith.constant 0 : i32
    return %arg0, %c0_i32 : i32, i32
  }
  func.func @transform_1(%arg0: i32) -> (i32, i32) {
    %c0_i32 = arith.constant 0 : i32
    %c0_i32_0 = arith.constant 0 : i32
    return %arg0, %c0_i32 : i32, i32
  }
  func.func @transform_2(%arg0: i32) -> (i32, i32) {
    %c0_i32 = arith.constant 0 : i32
    %c0_i32_0 = arith.constant 0 : i32
    return %arg0, %c0_i32 : i32, i32
  }
}

</mosaic_0001>

<bundles_post_ra>
// kernel: tpu_custom_call.1
= control target key start
LH: loop header
LB: loop body
LE: loop exit
PB: predicated region body
PF: predicated region fallthrough
CT: control target
= control target key end

     0   :  { %7 = vsyncpa [#allocation3], 0  ;;  %s1901_s0 = inlined_call_operand.hbm [shape: f32[2048,128], index: 0, kind: input, shape index: {}]   ;;  %s1902_s1 = inlined_call_operand.hbm [shape: f32[2048,128], index: 1, kind: input, shape index: {}]   ;;  %s1903_s2 = inlined_call_operand.vmem [shape: f32[2048,1], index: 2, kind: output, shape index: {}]  }
   0x1   :  { %9 = vsyncpa [#allocation3 + $0x1], 0 }
   0x2   :  { %10 = vsyncpa [#allocation5], 0 }
   0x3   :  { %12 = vsyncpa [#allocation5 + $0x1], 0  ;;  %s1252_s9 = smov 0   ;;  %s1254_s10 = smov 0  }
   0x4   :  { %s1256_s11 = smov 0   ;;  %s1258_s12 = smov 0  }
   0x5 LB: > { %s1070_s13 = sadd.s32 4294967295, %s1233_s12   ;;  %s1272_s14 = sadd.s32 1, %s1233_s12   ;;  %s1233_s12 = sphi %s1258_s12, %s1911_s12   ;;  %s1229_s11 = sphi %s1256_s11, %s1910_s11   ;;  %s1225_s10 = sphi %s1254_s10, %s1909_s10   ;;  %s1221_s9 = sphi %s1252_s9, %s1908_s9  }
   0x6   : > { %s22_s15 = ssub.s32 %s1233_s12, %s1272_s14  ;;  %s25_s16 = sadd.s32 1, %s1229_s11 }
   0x7   : > { %p23_p0 = scmp.eq.s32.totalorder %s22_s15, 0  ;;  %p32_p1 = scmp.ne.s32.totalorder %s1229_s11, %s1225_s10 }
   0x8   : > { %p33_p2 = scmp.eq.s32.totalorder %s1233_s12, 0  ;;  %p38_p3 = scmp.ne.s32.totalorder %s1225_s10, %s1221_s9 }
   0x9   : > { %s1282_s17 = scalar_select %p23_p0, %s1229_s11, %s25_s16  }
   0xa   : > { %p1284_p4 = por %p33_p2, %p32_p1  ;;  %p39_p5 = scmp.eq.s32.totalorder %s1070_s13, 0 }
   0xb   : > { %p1100_p6 = scmp.lt.s32.totalorder %s1233_s12, 2  ;;  %s1296_s20 = sand.u32 1, %s1229_s11  }
   0xc   : > { %p1291_p7 = por %p39_p5, %p38_p3  ;;  %s1074_s21 = sshll.u32 %s1296_s20, 10 }
   0xd   : > { %s1087_s22 = sshll.u32 %s1233_s12, 10  ;;  %s118_s26 = scalar_lea.vmem [#allocation2], %s1074_s21 }
   0xe   : > { %s123_s25 = scalar_lea.hbm %s1901_s0, %s1087_s22  ;;  %s126_s27 = sshll.u32 %s118_s26, 4  ;;  %s127_s27 = int_to_ptr.vmem [resolvable:$true] %s126_s27 }
   0xf   : > { %s124_s28 = sshll.u32 %s123_s25, 4  ;;  %p1309_p8 = pnand %p1100_p6, %p1284_p4  ;;  %s125_s28 = int_to_ptr.hbm [resolvable:$true] %s124_s28 }
  0x10   : > { %p1080_p9 = scmp.ge.s32.totalorder %s1233_s12, 1  ;;  %s115_s30 = scalar_lea.sflag [#allocation3], %s1296_s20 }
  0x11   : > { %s1135_s3 = sshra.s32 %s125_s28, 4  ;;  %p1139_p11 = pneg %p1309_p8  ;;  %s1136_s3 = int_to_ptr.hbm [resolvable:$true] %s1135_s3 }
  0x12   : > { %s1137_s4 = scalar_lea.hbm %s1136_s3, 1024  ;;  %s1142_s7 = scalar_lea.hbm %s1901_s0, 2048 }
  0x13   : > { %p1138_p10 = scmp.ne.s32.totalorder %s1136_s3, %s1137_s4  ;;  %p1143_p0 = scmp.lt.s32.totalorder %s1136_s3, %s1901_s0 }
  0x14   : > { %p1144_p1 = scmp.lt.s32.totalorder %s1142_s7, %s1137_s4 }
  0x15   : > { %p1140_p12 = pnand %p1139_p11, %p1138_p10 }
  0x16   : > { %p1145_p2 = por %p1144_p1, %p1143_p0 }
  0x17   : > { %p1141_p13 = pneg %p1140_p12 }
  0x19   : > { %p1146_p3 = pnand %p1145_p2, %p1141_p13 }
  0x1b   : > { %1149 = shalt.err (!%p1146_p3)
}
  0x1c   : > { %s1235_s15 = smov 128   ;;  %s1236_s16 = smov 8  }
  0x1d   : > { %1096 = dma.hbm_to_vmem [thread:$0]  (!%p1309_p8), %s125_s28, 16384, %s127_s27, %s115_s30, %s1235_s15, %s1235_s15, %s1236_s16  }
  0x1e   : > { %p156_p4 = scmp.lt.s32.totalorder %s1233_s12, 3  ;;  %s145_s24 = scalar_lea.hbm %s1902_s1, %s1087_s22 }
  0x1f   : > { %s146_s26 = sshll.u32 %s145_s24, 4  ;;  %s140_s3 = scalar_lea.vmem [#allocation4], %s1074_s21  ;;  %s147_s26 = int_to_ptr.hbm [resolvable:$true] %s146_s26 }
  0x20   : > { %p1336_p5 = pnand %p1080_p9, %p156_p4  ;;  %s148_s4 = sshll.u32 %s140_s3, 4  ;;  %s149_s4 = int_to_ptr.vmem [resolvable:$true] %s148_s4 }
  0x21   : > { %s137_s5 = scalar_lea.sflag [#allocation5], %s1296_s20  ;;  %s1165_s6 = sshra.s32 %s147_s26, 4  ;;  %s1166_s6 = int_to_ptr.hbm [resolvable:$true] %s1165_s6 }
  0x22   : > { %s1167_s27 = scalar_lea.hbm %s1166_s6, 1024  ;;  %s1172_s30 = scalar_lea.hbm %s1902_s1, 2048 }
  0x23   : > { %p1168_p6 = scmp.ne.s32.totalorder %s1166_s6, %s1167_s27  ;;  %p1173_p9 = scmp.lt.s32.totalorder %s1166_s6, %s1902_s1 }
  0x24   : > { %p1174_p13 = scmp.lt.s32.totalorder %s1172_s30, %s1167_s27 }
  0x25   : > { %p1170_p10 = pnand %p1168_p6, %p1139_p11 }
  0x26   : > { %p1175_p0 = por %p1174_p13, %p1173_p9 }
  0x27   : > { %p1171_p12 = pneg %p1170_p10 }
  0x29   : > { %p1176_p1 = pnand %p1175_p0, %p1171_p12 }
  0x2b   : > { %1179 = shalt.err (!%p1176_p1)
}
  0x2c   : > { %1099 = dma.hbm_to_vmem [thread:$0]  (!%p1309_p8), %s147_s26, 16384, %s149_s4, %s137_s5, %s1235_s15, %s1235_s15, %s1236_s16  }
  0x2d   : > { %160 = sbr.rel (%p1336_p5) target bundleno = 511 (0x1ff), region = 28  ;;  %s162_s20 = sand.u32 (!%p1336_p5), 1, %s1225_s10  }
  0x2e   : > { %s1081_s21 = sshll.u32 (!%p1336_p5), %s162_s20, 10  ;;  %s163_s9 = scalar_lea.sflag (!%p1336_p5), [#allocation3], %s162_s20 }
  0x2f   : > { %s1357_s18 = scalar_lea.vmem (!%p1336_p5), [#allocation2], %s1081_s21 }
  0x32   : > { %1212 = dma.done.wait (%p1291_p7), %s163_s9, 16384  }
  0x33   : > { %1214 = vsyncadd (%p1291_p7), %s163_s9, 4294950912  ;;  %s173_s23 = scalar_lea.sflag [#allocation5], %s162_s20  ;;  %s1363_s24 = scalar_lea.vmem [#allocation4], %s1081_s21 }
  0x34   : > { %1216 = dma.done.wait (%p1291_p7), %s173_s23, 16384  }
  0x35   : > { %1218 = vsyncadd (%p1291_p7), %s173_s23, 4294950912  ;;  %v213_v0 = vld [vmem:[%s1357_s18 + $0x10] sm:$0xff]  ;;  %v211_v2 = vld [vmem:[%s1357_s18] sm:$0xff]  ;;  %s1083_s19 = sshll.u32 %s1070_s13, 7  ;;  %vm851_vm0 = vcmask 7168  }
  0x36   : > { %v341_v1 = vld [vmem:[%s1363_s24 + $0x10] sm:$0xff]  ;;  %v339_v4 = vld [vmem:[%s1363_s24] sm:$0xff]  ;;  %v214_v9 = vld [vmem:[%s1357_s18 + $0x18] sm:$0xff]  ;;  %p206_p7 = scmp.lt.s32.totalorder %s1083_s19, 255 }
  0x37   : > { %v469_v3 = vmul.f32 %v341_v1, %v213_v0  ;;  %v215_v5 = vld [vmem:[%s1357_s18 + $0x20] sm:$0xff]  ;;  %v467_v7 = vmul.f32 %v339_v4, %v211_v2  ;;  %v342_v10 = vld [vmem:[%s1363_s24 + $0x18] sm:$0xff]  ;;  %v212_v11 = vld [vmem:[%s1357_s18 + $0x8] sm:$0xff] }
  0x38   : > { %v343_v6 = vld [vmem:[%s1363_s24 + $0x20] sm:$0xff]  ;;  %v340_v12 = vld [vmem:[%s1363_s24 + $0x8] sm:$0xff]  ;;  %v470_v15 = vmul.f32 %v342_v10, %v214_v9  ;;  %v218_v18 = vld [vmem:[%s1357_s18 + $0x38] sm:$0xff]  ;;  %s1913_s19 = smov (!%p206_p7, %s1083_s19), 255 }
  0x39   : > { %v471_v8 = vmul.f32 %v343_v6, %v215_v5  ;;  %599 = vadd.xlane.f32.xlu1 %v469_v3  ;;  %595 = vadd.xlane.f32.xlu0 %v467_v7  ;;  %v216_v13 = vld [vmem:[%s1357_s18 + $0x28] sm:$0xff]  ;;  %v468_v16 = vmul.f32 %v340_v12, %v212_v11  ;;  %v346_v19 = vld [vmem:[%s1363_s24 + $0x38] sm:$0xff]  ;;  %v217_v20 = vld [vmem:[%s1357_s18 + $0x30] sm:$0xff]  ;;  %s1084_s12 = sshll.u32 %s1913_s19, 3 }
  0x3a   : > { %v344_v14 = vld [vmem:[%s1363_s24 + $0x28] sm:$0xff]  ;;  %v345_v21 = vld [vmem:[%s1363_s24 + $0x30] sm:$0xff]  ;;  %v219_v22 = vld [vmem:[%s1357_s18 + $0x40] sm:$0xff]  ;;  %v474_v24 = vmul.f32 %v346_v19, %v218_v18  ;;  %s1464_s15 = scalar_lea.vmem %s1903_s2, %s1084_s12 }
  0x3b   : > { %603 = vadd.xlane.f32.xlu2 %v471_v8  ;;  %v472_v17 = vmul.f32 %v344_v14, %v216_v13  ;;  %v347_v23 = vld [vmem:[%s1363_s24 + $0x40] sm:$0xff]  ;;  %v473_v25 = vmul.f32 %v345_v21, %v217_v20  ;;  %v221_v27 = vld [vmem:[%s1357_s18 + $0x50] sm:$0xff]  ;;  %v220_v29 = vld [vmem:[%s1357_s18 + $0x48] sm:$0xff] }
  0x3c   : > { %v475_v26 = vmul.f32 %v347_v23, %v219_v22  ;;  %v349_v28 = vld [vmem:[%s1363_s24 + $0x50] sm:$0xff]  ;;  %v348_v30 = vld [vmem:[%s1363_s24 + $0x48] sm:$0xff]  ;;  %v222_v31 = vld [vmem:[%s1357_s18 + $0x58] sm:$0xff] }
  0x3d   : > { %v350_v32 = vld [vmem:[%s1363_s24 + $0x58] sm:$0xff]  ;;  %v477_v33 = vmul.f32 %v349_v28, %v221_v27  ;;  %v476_v34 = vmul.f32 %v348_v30, %v220_v29  ;;  %v224_v36 = vld [vmem:[%s1357_s18 + $0x68] sm:$0xff]  ;;  %v223_v38 = vld [vmem:[%s1357_s18 + $0x60] sm:$0xff] }
  0x3e   : > { %v478_v35 = vmul.f32 %v350_v32, %v222_v31  ;;  %v352_v37 = vld [vmem:[%s1363_s24 + $0x68] sm:$0xff]  ;;  %v351_v39 = vld [vmem:[%s1363_s24 + $0x60] sm:$0xff]  ;;  %v225_v40 = vld [vmem:[%s1357_s18 + $0x70] sm:$0xff] }
  0x3f   : > { %v353_v41 = vld [vmem:[%s1363_s24 + $0x70] sm:$0xff]  ;;  %v480_v42 = vmul.f32 %v352_v37, %v224_v36  ;;  %v479_v43 = vmul.f32 %v351_v39, %v223_v38  ;;  %v227_v45 = vld [vmem:[%s1357_s18 + $0x80] sm:$0xff]  ;;  %v226_v47 = vld [vmem:[%s1357_s18 + $0x78] sm:$0xff] }
  0x40   : > { %v481_v44 = vmul.f32 %v353_v41, %v225_v40  ;;  %v355_v46 = vld [vmem:[%s1363_s24 + $0x80] sm:$0xff]  ;;  %v354_v48 = vld [vmem:[%s1363_s24 + $0x78] sm:$0xff]  ;;  %v228_v49 = vld [vmem:[%s1357_s18 + $0x88] sm:$0xff] }
  0x41   : > { %601 = vadd.xlane.f32.xlu1 %v470_v15  ;;  %597 = vadd.xlane.f32.xlu0 %v468_v16  ;;  %v356_v50 = vld [vmem:[%s1363_s24 + $0x88] sm:$0xff]  ;;  %v483_v51 = vmul.f32 %v355_v46, %v227_v45  ;;  %v482_v52 = vmul.f32 %v354_v48, %v226_v47  ;;  %v230_v54 = vld [vmem:[%s1357_s18 + $0x98] sm:$0xff]  ;;  %v229_v56 = vld [vmem:[%s1357_s18 + $0x90] sm:$0xff] }
  0x42   : > { %v484_v53 = vmul.f32 %v356_v50, %v228_v49  ;;  %v358_v55 = vld [vmem:[%s1363_s24 + $0x98] sm:$0xff]  ;;  %v357_v57 = vld [vmem:[%s1363_s24 + $0x90] sm:$0xff]  ;;  %v231_v58 = vld [vmem:[%s1357_s18 + $0xa0] sm:$0xff] }
  0x43   : > { %605 = vadd.xlane.f32.xlu2 %v472_v17  ;;  %v359_v59 = vld [vmem:[%s1363_s24 + $0xa0] sm:$0xff]  ;;  %v486_v60 = vmul.f32 %v358_v55, %v230_v54  ;;  %v485_v61 = vmul.f32 %v357_v57, %v229_v56  ;;  %v233_v63 = vld [vmem:[%s1357_s18 + $0xb0] sm:$0xff]  ;;  %v232_v1 = vld [vmem:[%s1357_s18 + $0xa8] sm:$0xff] }
  0x44   : > { %v487_v62 = vmul.f32 %v359_v59, %v231_v58  ;;  %v361_v0 = vld [vmem:[%s1363_s24 + $0xb0] sm:$0xff]  ;;  %v360_v2 = vld [vmem:[%s1363_s24 + $0xa8] sm:$0xff]  ;;  %v234_v3 = vld [vmem:[%s1357_s18 + $0xb8] sm:$0xff] }
  0x45   : > { %v362_v4 = vld [vmem:[%s1363_s24 + $0xb8] sm:$0xff]  ;;  %v489_v5 = vmul.f32 %v361_v0, %v233_v63  ;;  %v488_v6 = vmul.f32 %v360_v2, %v232_v1  ;;  %v236_v8 = vld [vmem:[%s1357_s18 + $0xc8] sm:$0xff]  ;;  %v235_v10 = vld [vmem:[%s1357_s18 + $0xc0] sm:$0xff] }
  0x46   : > { %v490_v7 = vmul.f32 %v362_v4, %v234_v3  ;;  %v364_v9 = vld [vmem:[%s1363_s24 + $0xc8] sm:$0xff]  ;;  %v363_v11 = vld [vmem:[%s1363_s24 + $0xc0] sm:$0xff]  ;;  %v237_v12 = vld [vmem:[%s1357_s18 + $0xd0] sm:$0xff] }
  0x47   : > { %v365_v13 = vld [vmem:[%s1363_s24 + $0xd0] sm:$0xff]  ;;  %v492_v14 = vmul.f32 %v364_v9, %v236_v8  ;;  %v491_v15 = vmul.f32 %v363_v11, %v235_v10  ;;  %v239_v17 = vld [vmem:[%s1357_s18 + $0xe0] sm:$0xff]  ;;  %v238_v19 = vld [vmem:[%s1357_s18 + $0xd8] sm:$0xff] }
  0x48   : > { %v493_v16 = vmul.f32 %v365_v13, %v237_v12  ;;  %v367_v18 = vld [vmem:[%s1363_s24 + $0xe0] sm:$0xff]  ;;  %v366_v20 = vld [vmem:[%s1363_s24 + $0xd8] sm:$0xff]  ;;  %v240_v21 = vld [vmem:[%s1357_s18 + $0xe8] sm:$0xff] }
  0x49   : > { %609 = vadd.xlane.f32.xlu1 %v474_v24  ;;  %607 = vadd.xlane.f32.xlu0 %v473_v25  ;;  %v368_v22 = vld [vmem:[%s1363_s24 + $0xe8] sm:$0xff]  ;;  %v495_v23 = vmul.f32 %v367_v18, %v239_v17  ;;  %v494_v24 = vmul.f32 %v366_v20, %v238_v19  ;;  %v370_v27 = vld [vmem:[%s1363_s24 + $0xf8] sm:$0xff]  ;;  %v241_v28 = vld [vmem:[%s1357_s18 + $0xf0] sm:$0xff] }
  0x4a   : > { %v496_v25 = vmul.f32 %v368_v22, %v240_v21  ;;  %v369_v29 = vld [vmem:[%s1363_s24 + $0xf0] sm:$0xff]  ;;  %v243_v30 = vld [vmem:[%s1357_s18 + $0x100] sm:$0xff]  ;;  %v244_v37 = vld [vmem:[%s1357_s18 + $0x108] sm:$0xff] }
  0x4b   : > { %611 = vadd.xlane.f32.xlu2 %v475_v26  ;;  %v242_v26 = vld [vmem:[%s1357_s18 + $0xf8] sm:$0xff]  ;;  %v371_v31 = vld [vmem:[%s1363_s24 + $0x100] sm:$0xff]  ;;  %v373_v36 = vld [vmem:[%s1363_s24 + $0x110] sm:$0xff] }
  0x4c   : > { %v498_v32 = vmul.f32 %v370_v27, %v242_v26  ;;  %v372_v38 = vld [vmem:[%s1363_s24 + $0x108] sm:$0xff]  ;;  %v246_v39 = vld [vmem:[%s1357_s18 + $0x118] sm:$0xff]  ;;  %v247_v46 = vld [vmem:[%s1357_s18 + $0x120] sm:$0xff] }
  0x4d   : > { %v374_v40 = vld [vmem:[%s1363_s24 + $0x118] sm:$0xff]  ;;  %v376_v45 = vld [vmem:[%s1363_s24 + $0x128] sm:$0xff]  ;;  %v375_v47 = vld [vmem:[%s1363_s24 + $0x120] sm:$0xff] }
  0x4e   : > { %v249_v48 = vld [vmem:[%s1357_s18 + $0x130] sm:$0xff]  ;;  %v379_v54 = vld [vmem:[%s1363_s24 + $0x140] sm:$0xff]  ;;  %v250_v55 = vld [vmem:[%s1357_s18 + $0x138] sm:$0xff] }
  0x4f   : > { %v377_v49 = vld [vmem:[%s1363_s24 + $0x130] sm:$0xff]  ;;  %v378_v56 = vld [vmem:[%s1363_s24 + $0x138] sm:$0xff]  ;;  %v252_v57 = vld [vmem:[%s1357_s18 + $0x148] sm:$0xff] }
  0x50   : > { %v380_v58 = vld [vmem:[%s1363_s24 + $0x148] sm:$0xff]  ;;  %v382_v63 = vld [vmem:[%s1363_s24 + $0x158] sm:$0xff]  ;;  %v253_v0 = vld [vmem:[%s1357_s18 + $0x150] sm:$0xff] }
  0x51   : > { %615 = vadd.xlane.f32.xlu1 %v477_v33  ;;  %613 = vadd.xlane.f32.xlu0 %v476_v34  ;;  %v497_v33 = vmul.f32 %v369_v29, %v241_v28  ;;  %v499_v34 = vmul.f32 %v371_v31, %v243_v30  ;;  %v381_v1 = vld [vmem:[%s1363_s24 + $0x150] sm:$0xff]  ;;  %v255_v2 = vld [vmem:[%s1357_s18 + $0x160] sm:$0xff]  ;;  %v256_v9 = vld [vmem:[%s1357_s18 + $0x168] sm:$0xff] }
  0x52   : > { %v383_v3 = vld [vmem:[%s1363_s24 + $0x160] sm:$0xff]  ;;  %v385_v8 = vld [vmem:[%s1363_s24 + $0x170] sm:$0xff]  ;;  %v384_v10 = vld [vmem:[%s1363_s24 + $0x168] sm:$0xff] }
  0x53   : > { %617 = vadd.xlane.f32.xlu2 %v478_v35  ;;  %v245_v35 = vld [vmem:[%s1357_s18 + $0x110] sm:$0xff]  ;;  %v258_v11 = vld [vmem:[%s1357_s18 + $0x178] sm:$0xff]  ;;  %v512_v17 = vmul.f32 %v384_v10, %v256_v9  ;;  %v260_v19 = vld [vmem:[%s1357_s18 + $0x188] sm:$0xff] }
  0x54   : > { %v501_v41 = vmul.f32 %v373_v36, %v245_v35  ;;  %v386_v12 = vld [vmem:[%s1363_s24 + $0x178] sm:$0xff]  ;;  %v388_v20 = vld [vmem:[%s1363_s24 + $0x188] sm:$0xff]  ;;  %v259_v21 = vld [vmem:[%s1357_s18 + $0x180] sm:$0xff] }
  0x55   : > { %v514_v18 = vmul.f32 %v386_v12, %v258_v11  ;;  %v387_v22 = vld [vmem:[%s1363_s24 + $0x180] sm:$0xff]  ;;  %v516_v27 = vmul.f32 %v388_v20, %v260_v19  ;;  %v264_v35 = vld [vmem:[%s1357_s18 + $0x1a8] sm:$0xff] }
  0x56   : > { %v515_v29 = vmul.f32 %v387_v22, %v259_v21  ;;  %v263_v31 = vld [vmem:[%s1357_s18 + $0x1a0] sm:$0xff]  ;;  %v392_v36 = vld [vmem:[%s1363_s24 + $0x1a8] sm:$0xff] }
  0x57   : > { %v276_v19 = vld [vmem:[%s1357_s18 + $0x208] sm:$0xff] }
  0x58   : > { %v404_v20 = vld [vmem:[%s1363_s24 + $0x208] sm:$0xff] }
  0x59   : > { %621 = vadd.xlane.f32.xlu1 %v480_v42  ;;  %619 = vadd.xlane.f32.xlu0 %v479_v43  ;;  %v500_v42 = vmul.f32 %v372_v38, %v244_v37  ;;  %v502_v43 = vmul.f32 %v374_v40, %v246_v39 }
  0x5b   : > { %623 = vadd.xlane.f32.xlu2 %v481_v44  ;;  %v248_v44 = vld [vmem:[%s1357_s18 + $0x128] sm:$0xff] }
  0x5c   : > { %v504_v50 = vmul.f32 %v376_v45, %v248_v44  ;;  %v394_v44 = vld [vmem:[%s1363_s24 + $0x1b8] sm:$0xff]  ;;  %v265_v45 = vld [vmem:[%s1357_s18 + $0x1b0] sm:$0xff] }
  0x61   : > { %627 = vadd.xlane.f32.xlu1 %v483_v51  ;;  %625 = vadd.xlane.f32.xlu0 %v482_v52  ;;  %v503_v51 = vmul.f32 %v375_v47, %v247_v46  ;;  %v505_v52 = vmul.f32 %v377_v49, %v249_v48  ;;  %v393_v46 = vld [vmem:[%s1363_s24 + $0x1b0] sm:$0xff]  ;;  %v267_v47 = vld [vmem:[%s1357_s18 + $0x1c0] sm:$0xff] }
  0x62   : > { %v395_v48 = vld [vmem:[%s1363_s24 + $0x1c0] sm:$0xff] }
  0x63   : > { %629 = vadd.xlane.f32.xlu2 %v484_v53  ;;  %v251_v53 = vld [vmem:[%s1357_s18 + $0x140] sm:$0xff] }
  0x64   : > { %v507_v59 = vmul.f32 %v379_v54, %v251_v53  ;;  %v521_v53 = vmul.f32 %v393_v46, %v265_v45  ;;  %v523_v54 = vmul.f32 %v395_v48, %v267_v47 }
  0x69   : > { %633 = vadd.xlane.f32.xlu1 %v486_v60  ;;  %631 = vadd.xlane.f32.xlu0 %v485_v61  ;;  %v506_v60 = vmul.f32 %v378_v56, %v250_v55  ;;  %v508_v61 = vmul.f32 %v380_v58, %v252_v57  ;;  %v269_v55 = vld [vmem:[%s1357_s18 + $0x1d0] sm:$0xff]  ;;  %v268_v57 = vld [vmem:[%s1357_s18 + $0x1c8] sm:$0xff] }
  0x6a   : > { %v397_v56 = vld [vmem:[%s1363_s24 + $0x1d0] sm:$0xff]  ;;  %v396_v58 = vld [vmem:[%s1363_s24 + $0x1c8] sm:$0xff] }
  0x6b   : > { %635 = vadd.xlane.f32.xlu2 %v487_v62  ;;  %v254_v62 = vld [vmem:[%s1357_s18 + $0x158] sm:$0xff] }
  0x6c   : > { %v510_v4 = vmul.f32 %v382_v63, %v254_v62  ;;  %v525_v63 = vmul.f32 %v397_v56, %v269_v55  ;;  %v285_v55 = vld [vmem:[%s1357_s18 + $0x250] sm:$0xff] }
  0x6d   : > { %v413_v56 = vld [vmem:[%s1363_s24 + $0x250] sm:$0xff] }
  0x71   : > { %639 = vadd.xlane.f32.xlu1 %v489_v5  ;;  %637 = vadd.xlane.f32.xlu0 %v488_v6  ;;  %v509_v5 = vmul.f32 %v381_v1, %v253_v0  ;;  %v511_v6 = vmul.f32 %v383_v3, %v255_v2  ;;  %v524_v1 = vmul.f32 %v396_v58, %v268_v57  ;;  %v272_v3 = vld [vmem:[%s1357_s18 + $0x1e8] sm:$0xff] }
  0x73   : > { %641 = vadd.xlane.f32.xlu2 %v490_v7  ;;  %v257_v7 = vld [vmem:[%s1357_s18 + $0x170] sm:$0xff] }
  0x79   : > { %645 = vadd.xlane.f32.xlu1 %v492_v14  ;;  %643 = vadd.xlane.f32.xlu0 %v491_v15  ;;  %v513_v15 = vmul.f32 %v385_v8, %v257_v7  ;;  %v273_v7 = vld [vmem:[%s1357_s18 + $0x1f0] sm:$0xff] }
  0x7a   : > { %v401_v8 = vld [vmem:[%s1363_s24 + $0x1f0] sm:$0xff] }
  0x7b   : > { %647 = vadd.xlane.f32.xlu2 %v493_v16 }
  0x81   : > { %651 = vadd.xlane.f32.xlu1 %v495_v23  ;;  %649 = vadd.xlane.f32.xlu0 %v494_v24  ;;  %v261_v23 = vld [vmem:[%s1357_s18 + $0x190] sm:$0xff] }
  0x82   : > { %v389_v24 = vld [vmem:[%s1363_s24 + $0x190] sm:$0xff] }
  0x83   : > { %653 = vadd.xlane.f32.xlu2 %v496_v25  ;;  %v517_v30 = vmul.f32 %v389_v24, %v261_v23 }
  0x89   : > { %657 = vadd.xlane.f32.xlu1 %v498_v32  ;;  %655 = vadd.xlane.f32.xlu0 %v497_v33  ;;  %v391_v32 = vld [vmem:[%s1363_s24 + $0x1a0] sm:$0xff]  ;;  %v262_v33 = vld [vmem:[%s1357_s18 + $0x198] sm:$0xff] }
  0x8a   : > { %v519_v39 = vmul.f32 %v391_v32, %v263_v31  ;;  %v279_v31 = vld [vmem:[%s1357_s18 + $0x220] sm:$0xff] }
  0x8b   : > { %659 = vadd.xlane.f32.xlu2 %v499_v34  ;;  %v390_v34 = vld [vmem:[%s1363_s24 + $0x198] sm:$0xff]  ;;  %v407_v32 = vld [vmem:[%s1363_s24 + $0x220] sm:$0xff] }
  0x91   : > { %663 = vadd.xlane.f32.xlu1 %v501_v41  ;;  %661 = vadd.xlane.f32.xlu0 %v500_v42  ;;  %v518_v41 = vmul.f32 %v390_v34, %v262_v33  ;;  %v520_v42 = vmul.f32 %v392_v36, %v264_v35 }
  0x93   : > { %665 = vadd.xlane.f32.xlu2 %v502_v43  ;;  %v266_v43 = vld [vmem:[%s1357_s18 + $0x1b8] sm:$0xff] }
  0x99   : > { %669 = vadd.xlane.f32.xlu1 %v504_v50  ;;  %667 = vadd.xlane.f32.xlu0 %v503_v51  ;;  %v522_v51 = vmul.f32 %v394_v44, %v266_v43  ;;  %v282_v43 = vld [vmem:[%s1357_s18 + $0x238] sm:$0xff] }
  0x9a   : > { %v410_v44 = vld [vmem:[%s1363_s24 + $0x238] sm:$0xff] }
  0x9b   : > { %671 = vadd.xlane.f32.xlu2 %v505_v52 }
  0xa1   : > { %675 = vadd.xlane.f32.xlu1 %v507_v59  ;;  %673 = vadd.xlane.f32.xlu0 %v506_v60  ;;  %v270_v59 = vld [vmem:[%s1357_s18 + $0x1d8] sm:$0xff] }
  0xa2   : > { %v398_v60 = vld [vmem:[%s1363_s24 + $0x1d8] sm:$0xff] }
  0xa3   : > { %677 = vadd.xlane.f32.xlu2 %v508_v61  ;;  %v526_v2 = vmul.f32 %v398_v60, %v270_v59 }
  0xa9   : > { %681 = vadd.xlane.f32.xlu1 %v510_v4  ;;  %679 = vadd.xlane.f32.xlu0 %v509_v5  ;;  %v400_v4 = vld [vmem:[%s1363_s24 + $0x1e8] sm:$0xff]  ;;  %v271_v5 = vld [vmem:[%s1357_s18 + $0x1e0] sm:$0xff] }
  0xaa   : > { %v528_v11 = vmul.f32 %v400_v4, %v272_v3  ;;  %v288_v3 = vld [vmem:[%s1357_s18 + $0x268] sm:$0xff] }
  0xab   : > { %683 = vadd.xlane.f32.xlu2 %v511_v6  ;;  %v399_v6 = vld [vmem:[%s1363_s24 + $0x1e0] sm:$0xff]  ;;  %v416_v4 = vld [vmem:[%s1363_s24 + $0x268] sm:$0xff] }
  0xac   : > { %v600_v13 = vpop.xlane.xlu1 %599  ;;  %v596_v14 = vpop.xlane.xlu0 %595 }
  0xad   : > { %854 = vst.msk [vmem:[%s1464_s15 + $0x10] sm:$0xff] %vm851_vm0, %v600_v13  ;;  %v527_v13 = vmul.f32 %v399_v6, %v271_v5 }
  0xae   : > { %v604_v16 = vpop.xlane.xlu2 %603  ;;  %852 = vst.msk [vmem:[%s1464_s15] sm:$0xff] %vm851_vm0, %v596_v14  ;;  %v529_v14 = vmul.f32 %v401_v8, %v273_v7 }
  0xaf   : > { %856 = vst.msk [vmem:[%s1464_s15 + $0x20] sm:$0xff] %vm851_vm0, %v604_v16  ;;  %v403_v16 = vld [vmem:[%s1363_s24 + $0x200] sm:$0xff] }
  0xb1   : > { %687 = vadd.xlane.f32.xlu1 %v513_v15  ;;  %685 = vadd.xlane.f32.xlu0 %v512_v17  ;;  %v275_v15 = vld [vmem:[%s1357_s18 + $0x200] sm:$0xff]  ;;  %v274_v17 = vld [vmem:[%s1357_s18 + $0x1f8] sm:$0xff] }
  0xb2   : > { %v531_v23 = vmul.f32 %v403_v16, %v275_v15  ;;  %v291_v15 = vld [vmem:[%s1357_s18 + $0x280] sm:$0xff] }
  0xb3   : > { %689 = vadd.xlane.f32.xlu2 %v514_v18  ;;  %v402_v18 = vld [vmem:[%s1363_s24 + $0x1f8] sm:$0xff]  ;;  %v419_v16 = vld [vmem:[%s1363_s24 + $0x280] sm:$0xff] }
  0xb4   : > { %v602_v25 = vpop.xlane.xlu1 %601  ;;  %v598_v26 = vpop.xlane.xlu0 %597 }
  0xb5   : > { %855 = vst.msk [vmem:[%s1464_s15 + $0x18] sm:$0xff] %vm851_vm0, %v602_v25  ;;  %v530_v25 = vmul.f32 %v402_v18, %v274_v17 }
  0xb6   : > { %v606_v28 = vpop.xlane.xlu2 %605  ;;  %853 = vst.msk [vmem:[%s1464_s15 + $0x8] sm:$0xff] %vm851_vm0, %v598_v26  ;;  %v532_v26 = vmul.f32 %v404_v20, %v276_v19 }
  0xb7   : > { %857 = vst.msk [vmem:[%s1464_s15 + $0x28] sm:$0xff] %vm851_vm0, %v606_v28  ;;  %v406_v28 = vld [vmem:[%s1363_s24 + $0x218] sm:$0xff] }
  0xb9   : > { %693 = vadd.xlane.f32.xlu1 %v516_v27  ;;  %691 = vadd.xlane.f32.xlu0 %v515_v29  ;;  %v278_v27 = vld [vmem:[%s1357_s18 + $0x218] sm:$0xff]  ;;  %v277_v29 = vld [vmem:[%s1357_s18 + $0x210] sm:$0xff] }
  0xba   : > { %v534_v35 = vmul.f32 %v406_v28, %v278_v27  ;;  %v294_v27 = vld [vmem:[%s1357_s18 + $0x298] sm:$0xff] }
  0xbb   : > { %695 = vadd.xlane.f32.xlu2 %v517_v30  ;;  %v405_v30 = vld [vmem:[%s1363_s24 + $0x210] sm:$0xff]  ;;  %v422_v28 = vld [vmem:[%s1363_s24 + $0x298] sm:$0xff] }
  0xbc   : > { %v610_v37 = vpop.xlane.xlu1 %609  ;;  %v608_v38 = vpop.xlane.xlu0 %607 }
  0xbd   : > { %859 = vst.msk [vmem:[%s1464_s15 + $0x38] sm:$0xff] %vm851_vm0, %v610_v37  ;;  %v533_v37 = vmul.f32 %v405_v30, %v277_v29 }
  0xbe   : > { %v612_v40 = vpop.xlane.xlu2 %611  ;;  %858 = vst.msk [vmem:[%s1464_s15 + $0x30] sm:$0xff] %vm851_vm0, %v608_v38  ;;  %v535_v38 = vmul.f32 %v407_v32, %v279_v31 }
  0xbf   : > { %860 = vst.msk [vmem:[%s1464_s15 + $0x40] sm:$0xff] %vm851_vm0, %v612_v40  ;;  %v409_v40 = vld [vmem:[%s1363_s24 + $0x230] sm:$0xff] }
  0xc1   : > { %699 = vadd.xlane.f32.xlu1 %v519_v39  ;;  %697 = vadd.xlane.f32.xlu0 %v518_v41  ;;  %v281_v39 = vld [vmem:[%s1357_s18 + $0x230] sm:$0xff]  ;;  %v280_v41 = vld [vmem:[%s1357_s18 + $0x228] sm:$0xff] }
  0xc2   : > { %v537_v47 = vmul.f32 %v409_v40, %v281_v39  ;;  %v297_v39 = vld [vmem:[%s1357_s18 + $0x2b0] sm:$0xff] }
  0xc3   : > { %701 = vadd.xlane.f32.xlu2 %v520_v42  ;;  %v408_v42 = vld [vmem:[%s1363_s24 + $0x228] sm:$0xff]  ;;  %v425_v40 = vld [vmem:[%s1363_s24 + $0x2b0] sm:$0xff] }
  0xc4   : > { %v616_v49 = vpop.xlane.xlu1 %615  ;;  %v614_v50 = vpop.xlane.xlu0 %613 }
  0xc5   : > { %862 = vst.msk [vmem:[%s1464_s15 + $0x50] sm:$0xff] %vm851_vm0, %v616_v49  ;;  %v536_v49 = vmul.f32 %v408_v42, %v280_v41 }
  0xc6   : > { %v618_v52 = vpop.xlane.xlu2 %617  ;;  %861 = vst.msk [vmem:[%s1464_s15 + $0x48] sm:$0xff] %vm851_vm0, %v614_v50  ;;  %v538_v50 = vmul.f32 %v410_v44, %v282_v43 }
  0xc7   : > { %863 = vst.msk [vmem:[%s1464_s15 + $0x58] sm:$0xff] %vm851_vm0, %v618_v52  ;;  %v412_v52 = vld [vmem:[%s1363_s24 + $0x248] sm:$0xff] }
  0xc9   : > { %705 = vadd.xlane.f32.xlu1 %v522_v51  ;;  %703 = vadd.xlane.f32.xlu0 %v521_v53  ;;  %v284_v51 = vld [vmem:[%s1357_s18 + $0x248] sm:$0xff]  ;;  %v283_v53 = vld [vmem:[%s1357_s18 + $0x240] sm:$0xff] }
  0xca   : > { %v540_v59 = vmul.f32 %v412_v52, %v284_v51  ;;  %v300_v51 = vld [vmem:[%s1357_s18 + $0x2c8] sm:$0xff] }
  0xcb   : > { %707 = vadd.xlane.f32.xlu2 %v523_v54  ;;  %v411_v54 = vld [vmem:[%s1363_s24 + $0x240] sm:$0xff]  ;;  %v428_v52 = vld [vmem:[%s1363_s24 + $0x2c8] sm:$0xff] }
  0xcc   : > { %v622_v61 = vpop.xlane.xlu1 %621  ;;  %v620_v62 = vpop.xlane.xlu0 %619 }
  0xcd   : > { %865 = vst.msk [vmem:[%s1464_s15 + $0x68] sm:$0xff] %vm851_vm0, %v622_v61  ;;  %v539_v61 = vmul.f32 %v411_v54, %v283_v53 }
  0xce   : > { %v624_v0 = vpop.xlane.xlu2 %623  ;;  %864 = vst.msk [vmem:[%s1464_s15 + $0x60] sm:$0xff] %vm851_vm0, %v620_v62  ;;  %v541_v62 = vmul.f32 %v413_v56, %v285_v55 }
  0xcf   : > { %866 = vst.msk [vmem:[%s1464_s15 + $0x70] sm:$0xff] %vm851_vm0, %v624_v0  ;;  %v415_v0 = vld [vmem:[%s1363_s24 + $0x260] sm:$0xff] }
  0xd1   : > { %711 = vadd.xlane.f32.xlu1 %v525_v63  ;;  %709 = vadd.xlane.f32.xlu0 %v524_v1  ;;  %v287_v63 = vld [vmem:[%s1357_s18 + $0x260] sm:$0xff]  ;;  %v286_v1 = vld [vmem:[%s1357_s18 + $0x258] sm:$0xff] }
  0xd2   : > { %v543_v7 = vmul.f32 %v415_v0, %v287_v63  ;;  %v303_v63 = vld [vmem:[%s1357_s18 + $0x2e0] sm:$0xff] }
  0xd3   : > { %713 = vadd.xlane.f32.xlu2 %v526_v2  ;;  %v414_v2 = vld [vmem:[%s1363_s24 + $0x258] sm:$0xff]  ;;  %v431_v0 = vld [vmem:[%s1363_s24 + $0x2e0] sm:$0xff] }
  0xd4   : > { %v628_v9 = vpop.xlane.xlu1 %627  ;;  %v626_v10 = vpop.xlane.xlu0 %625 }
  0xd5   : > { %868 = vst.msk [vmem:[%s1464_s15 + $0x80] sm:$0xff] %vm851_vm0, %v628_v9  ;;  %v542_v9 = vmul.f32 %v414_v2, %v286_v1 }
  0xd6   : > { %v630_v12 = vpop.xlane.xlu2 %629  ;;  %867 = vst.msk [vmem:[%s1464_s15 + $0x78] sm:$0xff] %vm851_vm0, %v626_v10  ;;  %v544_v10 = vmul.f32 %v416_v4, %v288_v3 }
  0xd7   : > { %869 = vst.msk [vmem:[%s1464_s15 + $0x88] sm:$0xff] %vm851_vm0, %v630_v12  ;;  %v418_v12 = vld [vmem:[%s1363_s24 + $0x278] sm:$0xff] }
  0xd9   : > { %717 = vadd.xlane.f32.xlu1 %v528_v11  ;;  %715 = vadd.xlane.f32.xlu0 %v527_v13  ;;  %v290_v11 = vld [vmem:[%s1357_s18 + $0x278] sm:$0xff]  ;;  %v289_v13 = vld [vmem:[%s1357_s18 + $0x270] sm:$0xff] }
  0xda   : > { %v546_v19 = vmul.f32 %v418_v12, %v290_v11  ;;  %v306_v11 = vld [vmem:[%s1357_s18 + $0x2f8] sm:$0xff] }
  0xdb   : > { %719 = vadd.xlane.f32.xlu2 %v529_v14  ;;  %v417_v14 = vld [vmem:[%s1363_s24 + $0x270] sm:$0xff]  ;;  %v434_v12 = vld [vmem:[%s1363_s24 + $0x2f8] sm:$0xff] }
  0xdc   : > { %v634_v21 = vpop.xlane.xlu1 %633  ;;  %v632_v22 = vpop.xlane.xlu0 %631 }
  0xdd   : > { %871 = vst.msk [vmem:[%s1464_s15 + $0x98] sm:$0xff] %vm851_vm0, %v634_v21  ;;  %v545_v21 = vmul.f32 %v417_v14, %v289_v13 }
  0xde   : > { %v636_v24 = vpop.xlane.xlu2 %635  ;;  %870 = vst.msk [vmem:[%s1464_s15 + $0x90] sm:$0xff] %vm851_vm0, %v632_v22  ;;  %v547_v22 = vmul.f32 %v419_v16, %v291_v15 }
  0xdf   : > { %872 = vst.msk [vmem:[%s1464_s15 + $0xa0] sm:$0xff] %vm851_vm0, %v636_v24  ;;  %v421_v24 = vld [vmem:[%s1363_s24 + $0x290] sm:$0xff] }
  0xe1   : > { %723 = vadd.xlane.f32.xlu1 %v531_v23  ;;  %721 = vadd.xlane.f32.xlu0 %v530_v25  ;;  %v293_v23 = vld [vmem:[%s1357_s18 + $0x290] sm:$0xff]  ;;  %v292_v25 = vld [vmem:[%s1357_s18 + $0x288] sm:$0xff] }
  0xe2   : > { %v549_v31 = vmul.f32 %v421_v24, %v293_v23  ;;  %v309_v23 = vld [vmem:[%s1357_s18 + $0x310] sm:$0xff] }
  0xe3   : > { %725 = vadd.xlane.f32.xlu2 %v532_v26  ;;  %v420_v26 = vld [vmem:[%s1363_s24 + $0x288] sm:$0xff]  ;;  %v437_v24 = vld [vmem:[%s1363_s24 + $0x310] sm:$0xff] }
  0xe4   : > { %v640_v33 = vpop.xlane.xlu1 %639  ;;  %v638_v34 = vpop.xlane.xlu0 %637 }
  0xe5   : > { %874 = vst.msk [vmem:[%s1464_s15 + $0xb0] sm:$0xff] %vm851_vm0, %v640_v33  ;;  %v548_v33 = vmul.f32 %v420_v26, %v292_v25 }
  0xe6   : > { %v642_v36 = vpop.xlane.xlu2 %641  ;;  %873 = vst.msk [vmem:[%s1464_s15 + $0xa8] sm:$0xff] %vm851_vm0, %v638_v34  ;;  %v550_v34 = vmul.f32 %v422_v28, %v294_v27 }
  0xe7   : > { %875 = vst.msk [vmem:[%s1464_s15 + $0xb8] sm:$0xff] %vm851_vm0, %v642_v36  ;;  %v424_v36 = vld [vmem:[%s1363_s24 + $0x2a8] sm:$0xff] }
  0xe9   : > { %729 = vadd.xlane.f32.xlu1 %v534_v35  ;;  %727 = vadd.xlane.f32.xlu0 %v533_v37  ;;  %v296_v35 = vld [vmem:[%s1357_s18 + $0x2a8] sm:$0xff]  ;;  %v295_v37 = vld [vmem:[%s1357_s18 + $0x2a0] sm:$0xff] }
  0xea   : > { %v552_v43 = vmul.f32 %v424_v36, %v296_v35  ;;  %v312_v35 = vld [vmem:[%s1357_s18 + $0x328] sm:$0xff] }
  0xeb   : > { %731 = vadd.xlane.f32.xlu2 %v535_v38  ;;  %v423_v38 = vld [vmem:[%s1363_s24 + $0x2a0] sm:$0xff]  ;;  %v440_v36 = vld [vmem:[%s1363_s24 + $0x328] sm:$0xff] }
  0xec   : > { %v646_v45 = vpop.xlane.xlu1 %645  ;;  %v644_v46 = vpop.xlane.xlu0 %643 }
  0xed   : > { %877 = vst.msk [vmem:[%s1464_s15 + $0xc8] sm:$0xff] %vm851_vm0, %v646_v45  ;;  %v551_v45 = vmul.f32 %v423_v38, %v295_v37 }
  0xee   : > { %v648_v48 = vpop.xlane.xlu2 %647  ;;  %876 = vst.msk [vmem:[%s1464_s15 + $0xc0] sm:$0xff] %vm851_vm0, %v644_v46  ;;  %v553_v46 = vmul.f32 %v425_v40, %v297_v39 }
  0xef   : > { %878 = vst.msk [vmem:[%s1464_s15 + $0xd0] sm:$0xff] %vm851_vm0, %v648_v48  ;;  %v427_v48 = vld [vmem:[%s1363_s24 + $0x2c0] sm:$0xff] }
  0xf1   : > { %735 = vadd.xlane.f32.xlu1 %v537_v47  ;;  %733 = vadd.xlane.f32.xlu0 %v536_v49  ;;  %v299_v47 = vld [vmem:[%s1357_s18 + $0x2c0] sm:$0xff]  ;;  %v298_v49 = vld [vmem:[%s1357_s18 + $0x2b8] sm:$0xff] }
  0xf2   : > { %v555_v55 = vmul.f32 %v427_v48, %v299_v47  ;;  %v315_v47 = vld [vmem:[%s1357_s18 + $0x340] sm:$0xff] }
  0xf3   : > { %737 = vadd.xlane.f32.xlu2 %v538_v50  ;;  %v426_v50 = vld [vmem:[%s1363_s24 + $0x2b8] sm:$0xff]  ;;  %v443_v48 = vld [vmem:[%s1363_s24 + $0x340] sm:$0xff] }
  0xf4   : > { %v652_v57 = vpop.xlane.xlu1 %651  ;;  %v650_v58 = vpop.xlane.xlu0 %649 }
  0xf5   : > { %880 = vst.msk [vmem:[%s1464_s15 + $0xe0] sm:$0xff] %vm851_vm0, %v652_v57  ;;  %v554_v57 = vmul.f32 %v426_v50, %v298_v49 }
  0xf6   : > { %v654_v60 = vpop.xlane.xlu2 %653  ;;  %879 = vst.msk [vmem:[%s1464_s15 + $0xd8] sm:$0xff] %vm851_vm0, %v650_v58  ;;  %v556_v58 = vmul.f32 %v428_v52, %v300_v51 }
  0xf7   : > { %881 = vst.msk [vmem:[%s1464_s15 + $0xe8] sm:$0xff] %vm851_vm0, %v654_v60  ;;  %v430_v60 = vld [vmem:[%s1363_s24 + $0x2d8] sm:$0xff] }
  0xf9   : > { %741 = vadd.xlane.f32.xlu1 %v540_v59  ;;  %739 = vadd.xlane.f32.xlu0 %v539_v61  ;;  %v302_v59 = vld [vmem:[%s1357_s18 + $0x2d8] sm:$0xff]  ;;  %v301_v61 = vld [vmem:[%s1357_s18 + $0x2d0] sm:$0xff] }
  0xfa   : > { %v558_v3 = vmul.f32 %v430_v60, %v302_v59  ;;  %v318_v59 = vld [vmem:[%s1357_s18 + $0x358] sm:$0xff] }
  0xfb   : > { %743 = vadd.xlane.f32.xlu2 %v541_v62  ;;  %v429_v62 = vld [vmem:[%s1363_s24 + $0x2d0] sm:$0xff]  ;;  %v446_v60 = vld [vmem:[%s1363_s24 + $0x358] sm:$0xff] }
  0xfc   : > { %v658_v5 = vpop.xlane.xlu1 %657  ;;  %v656_v6 = vpop.xlane.xlu0 %655 }
  0xfd   : > { %883 = vst.msk [vmem:[%s1464_s15 + $0xf8] sm:$0xff] %vm851_vm0, %v658_v5  ;;  %v557_v5 = vmul.f32 %v429_v62, %v301_v61 }
  0xfe   : > { %v660_v8 = vpop.xlane.xlu2 %659  ;;  %882 = vst.msk [vmem:[%s1464_s15 + $0xf0] sm:$0xff] %vm851_vm0, %v656_v6  ;;  %v559_v6 = vmul.f32 %v431_v0, %v303_v63 }
  0xff   : > { %884 = vst.msk [vmem:[%s1464_s15 + $0x100] sm:$0xff] %vm851_vm0, %v660_v8  ;;  %v433_v8 = vld [vmem:[%s1363_s24 + $0x2f0] sm:$0xff] }
 0x101   : > { %747 = vadd.xlane.f32.xlu1 %v543_v7  ;;  %745 = vadd.xlane.f32.xlu0 %v542_v9  ;;  %v305_v7 = vld [vmem:[%s1357_s18 + $0x2f0] sm:$0xff]  ;;  %v304_v9 = vld [vmem:[%s1357_s18 + $0x2e8] sm:$0xff] }
 0x102   : > { %v561_v15 = vmul.f32 %v433_v8, %v305_v7  ;;  %v321_v7 = vld [vmem:[%s1357_s18 + $0x370] sm:$0xff] }
 0x103   : > { %749 = vadd.xlane.f32.xlu2 %v544_v10  ;;  %v432_v10 = vld [vmem:[%s1363_s24 + $0x2e8] sm:$0xff]  ;;  %v449_v8 = vld [vmem:[%s1363_s24 + $0x370] sm:$0xff] }
 0x104   : > { %v664_v17 = vpop.xlane.xlu1 %663  ;;  %v662_v18 = vpop.xlane.xlu0 %661 }
 0x105   : > { %886 = vst.msk [vmem:[%s1464_s15 + $0x110] sm:$0xff] %vm851_vm0, %v664_v17  ;;  %v560_v17 = vmul.f32 %v432_v10, %v304_v9 }
 0x106   : > { %v666_v20 = vpop.xlane.xlu2 %665  ;;  %885 = vst.msk [vmem:[%s1464_s15 + $0x108] sm:$0xff] %vm851_vm0, %v662_v18  ;;  %v562_v18 = vmul.f32 %v434_v12, %v306_v11 }
 0x107   : > { %887 = vst.msk [vmem:[%s1464_s15 + $0x118] sm:$0xff] %vm851_vm0, %v666_v20  ;;  %v436_v20 = vld [vmem:[%s1363_s24 + $0x308] sm:$0xff] }
 0x109   : > { %753 = vadd.xlane.f32.xlu1 %v546_v19  ;;  %751 = vadd.xlane.f32.xlu0 %v545_v21  ;;  %v308_v19 = vld [vmem:[%s1357_s18 + $0x308] sm:$0xff]  ;;  %v307_v21 = vld [vmem:[%s1357_s18 + $0x300] sm:$0xff] }
 0x10a   : > { %v564_v27 = vmul.f32 %v436_v20, %v308_v19  ;;  %v324_v19 = vld [vmem:[%s1357_s18 + $0x388] sm:$0xff] }
 0x10b   : > { %755 = vadd.xlane.f32.xlu2 %v547_v22  ;;  %v435_v22 = vld [vmem:[%s1363_s24 + $0x300] sm:$0xff]  ;;  %v452_v20 = vld [vmem:[%s1363_s24 + $0x388] sm:$0xff] }
 0x10c   : > { %v670_v29 = vpop.xlane.xlu1 %669  ;;  %v668_v30 = vpop.xlane.xlu0 %667 }
 0x10d   : > { %889 = vst.msk [vmem:[%s1464_s15 + $0x128] sm:$0xff] %vm851_vm0, %v670_v29  ;;  %v563_v29 = vmul.f32 %v435_v22, %v307_v21 }
 0x10e   : > { %v672_v32 = vpop.xlane.xlu2 %671  ;;  %888 = vst.msk [vmem:[%s1464_s15 + $0x120] sm:$0xff] %vm851_vm0, %v668_v30  ;;  %v565_v30 = vmul.f32 %v437_v24, %v309_v23 }
 0x10f   : > { %890 = vst.msk [vmem:[%s1464_s15 + $0x130] sm:$0xff] %vm851_vm0, %v672_v32  ;;  %v439_v32 = vld [vmem:[%s1363_s24 + $0x320] sm:$0xff] }
 0x111   : > { %759 = vadd.xlane.f32.xlu1 %v549_v31  ;;  %757 = vadd.xlane.f32.xlu0 %v548_v33  ;;  %v311_v31 = vld [vmem:[%s1357_s18 + $0x320] sm:$0xff]  ;;  %v310_v33 = vld [vmem:[%s1357_s18 + $0x318] sm:$0xff] }
 0x112   : > { %v567_v39 = vmul.f32 %v439_v32, %v311_v31  ;;  %v327_v31 = vld [vmem:[%s1357_s18 + $0x3a0] sm:$0xff] }
 0x113   : > { %761 = vadd.xlane.f32.xlu2 %v550_v34  ;;  %v438_v34 = vld [vmem:[%s1363_s24 + $0x318] sm:$0xff]  ;;  %v455_v32 = vld [vmem:[%s1363_s24 + $0x3a0] sm:$0xff] }
 0x114   : > { %v676_v41 = vpop.xlane.xlu1 %675  ;;  %v674_v42 = vpop.xlane.xlu0 %673 }
 0x115   : > { %892 = vst.msk [vmem:[%s1464_s15 + $0x140] sm:$0xff] %vm851_vm0, %v676_v41  ;;  %v566_v41 = vmul.f32 %v438_v34, %v310_v33 }
 0x116   : > { %v678_v44 = vpop.xlane.xlu2 %677  ;;  %891 = vst.msk [vmem:[%s1464_s15 + $0x138] sm:$0xff] %vm851_vm0, %v674_v42  ;;  %v568_v42 = vmul.f32 %v440_v36, %v312_v35 }
 0x117   : > { %893 = vst.msk [vmem:[%s1464_s15 + $0x148] sm:$0xff] %vm851_vm0, %v678_v44  ;;  %v442_v44 = vld [vmem:[%s1363_s24 + $0x338] sm:$0xff] }
 0x119   : > { %765 = vadd.xlane.f32.xlu1 %v552_v43  ;;  %763 = vadd.xlane.f32.xlu0 %v551_v45  ;;  %v314_v43 = vld [vmem:[%s1357_s18 + $0x338] sm:$0xff]  ;;  %v313_v45 = vld [vmem:[%s1357_s18 + $0x330] sm:$0xff] }
 0x11a   : > { %v570_v51 = vmul.f32 %v442_v44, %v314_v43  ;;  %v330_v43 = vld [vmem:[%s1357_s18 + $0x3b8] sm:$0xff] }
 0x11b   : > { %767 = vadd.xlane.f32.xlu2 %v553_v46  ;;  %v441_v46 = vld [vmem:[%s1363_s24 + $0x330] sm:$0xff]  ;;  %v458_v44 = vld [vmem:[%s1363_s24 + $0x3b8] sm:$0xff] }
 0x11c   : > { %v682_v53 = vpop.xlane.xlu1 %681  ;;  %v680_v54 = vpop.xlane.xlu0 %679 }
 0x11d   : > { %895 = vst.msk [vmem:[%s1464_s15 + $0x158] sm:$0xff] %vm851_vm0, %v682_v53  ;;  %v569_v53 = vmul.f32 %v441_v46, %v313_v45 }
 0x11e   : > { %v684_v56 = vpop.xlane.xlu2 %683  ;;  %894 = vst.msk [vmem:[%s1464_s15 + $0x150] sm:$0xff] %vm851_vm0, %v680_v54  ;;  %v571_v54 = vmul.f32 %v443_v48, %v315_v47 }
 0x11f   : > { %896 = vst.msk [vmem:[%s1464_s15 + $0x160] sm:$0xff] %vm851_vm0, %v684_v56  ;;  %v445_v56 = vld [vmem:[%s1363_s24 + $0x350] sm:$0xff] }
 0x121   : > { %771 = vadd.xlane.f32.xlu1 %v555_v55  ;;  %769 = vadd.xlane.f32.xlu0 %v554_v57  ;;  %v317_v55 = vld [vmem:[%s1357_s18 + $0x350] sm:$0xff]  ;;  %v316_v57 = vld [vmem:[%s1357_s18 + $0x348] sm:$0xff] }
 0x122   : > { %v573_v63 = vmul.f32 %v445_v56, %v317_v55  ;;  %v333_v55 = vld [vmem:[%s1357_s18 + $0x3d0] sm:$0xff] }
 0x123   : > { %773 = vadd.xlane.f32.xlu2 %v556_v58  ;;  %v444_v58 = vld [vmem:[%s1363_s24 + $0x348] sm:$0xff]  ;;  %v461_v56 = vld [vmem:[%s1363_s24 + $0x3d0] sm:$0xff] }
 0x124   : > { %v688_v1 = vpop.xlane.xlu1 %687  ;;  %v686_v2 = vpop.xlane.xlu0 %685 }
 0x125   : > { %898 = vst.msk [vmem:[%s1464_s15 + $0x170] sm:$0xff] %vm851_vm0, %v688_v1  ;;  %v572_v1 = vmul.f32 %v444_v58, %v316_v57 }
 0x126   : > { %v690_v4 = vpop.xlane.xlu2 %689  ;;  %897 = vst.msk [vmem:[%s1464_s15 + $0x168] sm:$0xff] %vm851_vm0, %v686_v2  ;;  %v574_v2 = vmul.f32 %v446_v60, %v318_v59 }
 0x127   : > { %899 = vst.msk [vmem:[%s1464_s15 + $0x178] sm:$0xff] %vm851_vm0, %v690_v4  ;;  %v448_v4 = vld [vmem:[%s1363_s24 + $0x368] sm:$0xff] }
 0x129   : > { %777 = vadd.xlane.f32.xlu1 %v558_v3  ;;  %775 = vadd.xlane.f32.xlu0 %v557_v5  ;;  %v320_v3 = vld [vmem:[%s1357_s18 + $0x368] sm:$0xff]  ;;  %v319_v5 = vld [vmem:[%s1357_s18 + $0x360] sm:$0xff] }
 0x12a   : > { %v576_v11 = vmul.f32 %v448_v4, %v320_v3  ;;  %v336_v3 = vld [vmem:[%s1357_s18 + $0x3e8] sm:$0xff] }
 0x12b   : > { %779 = vadd.xlane.f32.xlu2 %v559_v6  ;;  %v447_v6 = vld [vmem:[%s1363_s24 + $0x360] sm:$0xff]  ;;  %v464_v4 = vld [vmem:[%s1363_s24 + $0x3e8] sm:$0xff] }
 0x12c   : > { %v694_v13 = vpop.xlane.xlu1 %693  ;;  %v692_v14 = vpop.xlane.xlu0 %691 }
 0x12d   : > { %901 = vst.msk [vmem:[%s1464_s15 + $0x188] sm:$0xff] %vm851_vm0, %v694_v13  ;;  %v575_v13 = vmul.f32 %v447_v6, %v319_v5 }
 0x12e   : > { %v696_v16 = vpop.xlane.xlu2 %695  ;;  %900 = vst.msk [vmem:[%s1464_s15 + $0x180] sm:$0xff] %vm851_vm0, %v692_v14  ;;  %v577_v14 = vmul.f32 %v449_v8, %v321_v7 }
 0x12f   : > { %902 = vst.msk [vmem:[%s1464_s15 + $0x190] sm:$0xff] %vm851_vm0, %v696_v16  ;;  %v451_v16 = vld [vmem:[%s1363_s24 + $0x380] sm:$0xff] }
 0x131   : > { %783 = vadd.xlane.f32.xlu1 %v561_v15  ;;  %781 = vadd.xlane.f32.xlu0 %v560_v17  ;;  %v323_v15 = vld [vmem:[%s1357_s18 + $0x380] sm:$0xff]  ;;  %v322_v17 = vld [vmem:[%s1357_s18 + $0x378] sm:$0xff] }
 0x132   : > { %v579_v23 = vmul.f32 %v451_v16, %v323_v15 }
 0x133   : > { %785 = vadd.xlane.f32.xlu2 %v562_v18  ;;  %v450_v18 = vld [vmem:[%s1363_s24 + $0x378] sm:$0xff] }
 0x134   : > { %v700_v25 = vpop.xlane.xlu1 %699  ;;  %v698_v26 = vpop.xlane.xlu0 %697 }
 0x135   : > { %904 = vst.msk [vmem:[%s1464_s15 + $0x1a0] sm:$0xff] %vm851_vm0, %v700_v25  ;;  %v578_v25 = vmul.f32 %v450_v18, %v322_v17 }
 0x136   : > { %v702_v28 = vpop.xlane.xlu2 %701  ;;  %903 = vst.msk [vmem:[%s1464_s15 + $0x198] sm:$0xff] %vm851_vm0, %v698_v26  ;;  %v580_v26 = vmul.f32 %v452_v20, %v324_v19 }
 0x137   : > { %905 = vst.msk [vmem:[%s1464_s15 + $0x1a8] sm:$0xff] %vm851_vm0, %v702_v28  ;;  %v454_v28 = vld [vmem:[%s1363_s24 + $0x398] sm:$0xff] }
 0x139   : > { %789 = vadd.xlane.f32.xlu1 %v564_v27  ;;  %787 = vadd.xlane.f32.xlu0 %v563_v29  ;;  %v326_v27 = vld [vmem:[%s1357_s18 + $0x398] sm:$0xff]  ;;  %v325_v29 = vld [vmem:[%s1357_s18 + $0x390] sm:$0xff] }
 0x13a   : > { %v582_v35 = vmul.f32 %v454_v28, %v326_v27 }
 0x13b   : > { %791 = vadd.xlane.f32.xlu2 %v565_v30  ;;  %v453_v30 = vld [vmem:[%s1363_s24 + $0x390] sm:$0xff] }
 0x13c   : > { %v706_v37 = vpop.xlane.xlu1 %705  ;;  %v704_v38 = vpop.xlane.xlu0 %703 }
 0x13d   : > { %907 = vst.msk [vmem:[%s1464_s15 + $0x1b8] sm:$0xff] %vm851_vm0, %v706_v37  ;;  %v581_v37 = vmul.f32 %v453_v30, %v325_v29 }
 0x13e   : > { %v708_v40 = vpop.xlane.xlu2 %707  ;;  %906 = vst.msk [vmem:[%s1464_s15 + $0x1b0] sm:$0xff] %vm851_vm0, %v704_v38  ;;  %v583_v38 = vmul.f32 %v455_v32, %v327_v31 }
 0x13f   : > { %908 = vst.msk [vmem:[%s1464_s15 + $0x1c0] sm:$0xff] %vm851_vm0, %v708_v40  ;;  %v457_v40 = vld [vmem:[%s1363_s24 + $0x3b0] sm:$0xff] }
 0x141   : > { %795 = vadd.xlane.f32.xlu1 %v567_v39  ;;  %793 = vadd.xlane.f32.xlu0 %v566_v41  ;;  %v329_v39 = vld [vmem:[%s1357_s18 + $0x3b0] sm:$0xff]  ;;  %v328_v41 = vld [vmem:[%s1357_s18 + $0x3a8] sm:$0xff] }
 0x142   : > { %v585_v47 = vmul.f32 %v457_v40, %v329_v39 }
 0x143   : > { %797 = vadd.xlane.f32.xlu2 %v568_v42  ;;  %v456_v42 = vld [vmem:[%s1363_s24 + $0x3a8] sm:$0xff] }
 0x144   : > { %v712_v49 = vpop.xlane.xlu1 %711  ;;  %v710_v50 = vpop.xlane.xlu0 %709 }
 0x145   : > { %910 = vst.msk [vmem:[%s1464_s15 + $0x1d0] sm:$0xff] %vm851_vm0, %v712_v49  ;;  %v584_v49 = vmul.f32 %v456_v42, %v328_v41 }
 0x146   : > { %v714_v52 = vpop.xlane.xlu2 %713  ;;  %909 = vst.msk [vmem:[%s1464_s15 + $0x1c8] sm:$0xff] %vm851_vm0, %v710_v50  ;;  %v586_v50 = vmul.f32 %v458_v44, %v330_v43 }
 0x147   : > { %911 = vst.msk [vmem:[%s1464_s15 + $0x1d8] sm:$0xff] %vm851_vm0, %v714_v52  ;;  %v460_v52 = vld [vmem:[%s1363_s24 + $0x3c8] sm:$0xff] }
 0x149   : > { %801 = vadd.xlane.f32.xlu1 %v570_v51  ;;  %799 = vadd.xlane.f32.xlu0 %v569_v53  ;;  %v332_v51 = vld [vmem:[%s1357_s18 + $0x3c8] sm:$0xff]  ;;  %v331_v53 = vld [vmem:[%s1357_s18 + $0x3c0] sm:$0xff] }
 0x14a   : > { %v588_v59 = vmul.f32 %v460_v52, %v332_v51 }
 0x14b   : > { %803 = vadd.xlane.f32.xlu2 %v571_v54  ;;  %v459_v54 = vld [vmem:[%s1363_s24 + $0x3c0] sm:$0xff] }
 0x14c   : > { %v718_v61 = vpop.xlane.xlu1 %717  ;;  %v716_v62 = vpop.xlane.xlu0 %715 }
 0x14d   : > { %913 = vst.msk [vmem:[%s1464_s15 + $0x1e8] sm:$0xff] %vm851_vm0, %v718_v61  ;;  %v587_v61 = vmul.f32 %v459_v54, %v331_v53 }
 0x14e   : > { %v720_v0 = vpop.xlane.xlu2 %719  ;;  %912 = vst.msk [vmem:[%s1464_s15 + $0x1e0] sm:$0xff] %vm851_vm0, %v716_v62  ;;  %v589_v62 = vmul.f32 %v461_v56, %v333_v55 }
 0x14f   : > { %914 = vst.msk [vmem:[%s1464_s15 + $0x1f0] sm:$0xff] %vm851_vm0, %v720_v0  ;;  %v463_v0 = vld [vmem:[%s1363_s24 + $0x3e0] sm:$0xff] }
 0x151   : > { %807 = vadd.xlane.f32.xlu1 %v573_v63  ;;  %805 = vadd.xlane.f32.xlu0 %v572_v1  ;;  %v335_v63 = vld [vmem:[%s1357_s18 + $0x3e0] sm:$0xff]  ;;  %v334_v1 = vld [vmem:[%s1357_s18 + $0x3d8] sm:$0xff] }
 0x152   : > { %v591_v7 = vmul.f32 %v463_v0, %v335_v63 }
 0x153   : > { %809 = vadd.xlane.f32.xlu2 %v574_v2  ;;  %v462_v2 = vld [vmem:[%s1363_s24 + $0x3d8] sm:$0xff] }
 0x154   : > { %v724_v9 = vpop.xlane.xlu1 %723  ;;  %v722_v10 = vpop.xlane.xlu0 %721 }
 0x155   : > { %916 = vst.msk [vmem:[%s1464_s15 + $0x200] sm:$0xff] %vm851_vm0, %v724_v9  ;;  %v590_v9 = vmul.f32 %v462_v2, %v334_v1 }
 0x156   : > { %v726_v12 = vpop.xlane.xlu2 %725  ;;  %915 = vst.msk [vmem:[%s1464_s15 + $0x1f8] sm:$0xff] %vm851_vm0, %v722_v10  ;;  %v592_v10 = vmul.f32 %v464_v4, %v336_v3 }
 0x157   : > { %917 = vst.msk [vmem:[%s1464_s15 + $0x208] sm:$0xff] %vm851_vm0, %v726_v12  ;;  %v466_v12 = vld [vmem:[%s1363_s24 + $0x3f8] sm:$0xff] }
 0x159   : > { %813 = vadd.xlane.f32.xlu1 %v576_v11  ;;  %811 = vadd.xlane.f32.xlu0 %v575_v13  ;;  %v338_v11 = vld [vmem:[%s1357_s18 + $0x3f8] sm:$0xff]  ;;  %v337_v13 = vld [vmem:[%s1357_s18 + $0x3f0] sm:$0xff] }
 0x15a   : > { %v594_v17 = vmul.f32 %v466_v12, %v338_v11 }
 0x15b   : > { %815 = vadd.xlane.f32.xlu2 %v577_v14  ;;  %v465_v14 = vld [vmem:[%s1363_s24 + $0x3f0] sm:$0xff] }
 0x15c   : > { %v730_v21 = vpop.xlane.xlu1 %729  ;;  %v728_v22 = vpop.xlane.xlu0 %727  ;;  %v593_v19 = vmul.f32 %v465_v14, %v337_v13 }
 0x15d   : > { %919 = vst.msk [vmem:[%s1464_s15 + $0x218] sm:$0xff] %vm851_vm0, %v730_v21 }
 0x15e   : > { %v732_v24 = vpop.xlane.xlu2 %731  ;;  %918 = vst.msk [vmem:[%s1464_s15 + $0x210] sm:$0xff] %vm851_vm0, %v728_v22 }
 0x15f   : > { %920 = vst.msk [vmem:[%s1464_s15 + $0x220] sm:$0xff] %vm851_vm0, %v732_v24 }
 0x161   : > { %819 = vadd.xlane.f32.xlu1 %v579_v23  ;;  %817 = vadd.xlane.f32.xlu0 %v578_v25 }
 0x163   : > { %821 = vadd.xlane.f32.xlu2 %v580_v26 }
 0x164   : > { %v736_v33 = vpop.xlane.xlu1 %735  ;;  %v734_v34 = vpop.xlane.xlu0 %733 }
 0x165   : > { %922 = vst.msk [vmem:[%s1464_s15 + $0x230] sm:$0xff] %vm851_vm0, %v736_v33 }
 0x166   : > { %v738_v36 = vpop.xlane.xlu2 %737  ;;  %921 = vst.msk [vmem:[%s1464_s15 + $0x228] sm:$0xff] %vm851_vm0, %v734_v34 }
 0x167   : > { %923 = vst.msk [vmem:[%s1464_s15 + $0x238] sm:$0xff] %vm851_vm0, %v738_v36 }
 0x169   : > { %825 = vadd.xlane.f32.xlu1 %v582_v35  ;;  %823 = vadd.xlane.f32.xlu0 %v581_v37 }
 0x16b   : > { %827 = vadd.xlane.f32.xlu2 %v583_v38 }
 0x16c   : > { %v742_v45 = vpop.xlane.xlu1 %741  ;;  %v740_v46 = vpop.xlane.xlu0 %739 }
 0x16d   : > { %925 = vst.msk [vmem:[%s1464_s15 + $0x248] sm:$0xff] %vm851_vm0, %v742_v45 }
 0x16e   : > { %v744_v48 = vpop.xlane.xlu2 %743  ;;  %924 = vst.msk [vmem:[%s1464_s15 + $0x240] sm:$0xff] %vm851_vm0, %v740_v46 }
 0x16f   : > { %926 = vst.msk [vmem:[%s1464_s15 + $0x250] sm:$0xff] %vm851_vm0, %v744_v48 }
 0x171   : > { %831 = vadd.xlane.f32.xlu1 %v585_v47  ;;  %829 = vadd.xlane.f32.xlu0 %v584_v49 }
 0x173   : > { %833 = vadd.xlane.f32.xlu2 %v586_v50 }
 0x174   : > { %v748_v57 = vpop.xlane.xlu1 %747  ;;  %v746_v58 = vpop.xlane.xlu0 %745 }
 0x175   : > { %928 = vst.msk [vmem:[%s1464_s15 + $0x260] sm:$0xff] %vm851_vm0, %v748_v57 }
 0x176   : > { %v750_v60 = vpop.xlane.xlu2 %749  ;;  %927 = vst.msk [vmem:[%s1464_s15 + $0x258] sm:$0xff] %vm851_vm0, %v746_v58 }
 0x177   : > { %929 = vst.msk [vmem:[%s1464_s15 + $0x268] sm:$0xff] %vm851_vm0, %v750_v60 }
 0x179   : > { %837 = vadd.xlane.f32.xlu1 %v588_v59  ;;  %835 = vadd.xlane.f32.xlu0 %v587_v61 }
 0x17b   : > { %839 = vadd.xlane.f32.xlu2 %v589_v62 }
 0x17c   : > { %v754_v5 = vpop.xlane.xlu1 %753  ;;  %v752_v6 = vpop.xlane.xlu0 %751 }
 0x17d   : > { %931 = vst.msk [vmem:[%s1464_s15 + $0x278] sm:$0xff] %vm851_vm0, %v754_v5 }
 0x17e   : > { %v756_v8 = vpop.xlane.xlu2 %755  ;;  %930 = vst.msk [vmem:[%s1464_s15 + $0x270] sm:$0xff] %vm851_vm0, %v752_v6 }
 0x17f   : > { %932 = vst.msk [vmem:[%s1464_s15 + $0x280] sm:$0xff] %vm851_vm0, %v756_v8 }
 0x181   : > { %843 = vadd.xlane.f32.xlu1 %v591_v7  ;;  %841 = vadd.xlane.f32.xlu0 %v590_v9 }
 0x183   : > { %845 = vadd.xlane.f32.xlu2 %v592_v10 }
 0x184   : > { %v760_v15 = vpop.xlane.xlu1 %759  ;;  %v758_v16 = vpop.xlane.xlu0 %757 }
 0x185   : > { %934 = vst.msk [vmem:[%s1464_s15 + $0x290] sm:$0xff] %vm851_vm0, %v760_v15 }
 0x186   : > { %v762_v18 = vpop.xlane.xlu2 %761  ;;  %933 = vst.msk [vmem:[%s1464_s15 + $0x288] sm:$0xff] %vm851_vm0, %v758_v16 }
 0x187   : > { %935 = vst.msk [vmem:[%s1464_s15 + $0x298] sm:$0xff] %vm851_vm0, %v762_v18 }
 0x189   : > { %849 = vadd.xlane.f32.xlu1 %v594_v17  ;;  %847 = vadd.xlane.f32.xlu0 %v593_v19 }
 0x18c   : > { %v766_v20 = vpop.xlane.xlu1 %765  ;;  %v764_v21 = vpop.xlane.xlu0 %763 }
 0x18d   : > { %937 = vst.msk [vmem:[%s1464_s15 + $0x2a8] sm:$0xff] %vm851_vm0, %v766_v20 }
 0x18e   : > { %v768_v22 = vpop.xlane.xlu2 %767  ;;  %936 = vst.msk [vmem:[%s1464_s15 + $0x2a0] sm:$0xff] %vm851_vm0, %v764_v21 }
 0x18f   : > { %938 = vst.msk [vmem:[%s1464_s15 + $0x2b0] sm:$0xff] %vm851_vm0, %v768_v22 }
 0x194   : > { %v772_v23 = vpop.xlane.xlu1 %771  ;;  %v770_v24 = vpop.xlane.xlu0 %769 }
 0x195   : > { %940 = vst.msk [vmem:[%s1464_s15 + $0x2c0] sm:$0xff] %vm851_vm0, %v772_v23 }
 0x196   : > { %v774_v25 = vpop.xlane.xlu2 %773  ;;  %939 = vst.msk [vmem:[%s1464_s15 + $0x2b8] sm:$0xff] %vm851_vm0, %v770_v24 }
 0x197   : > { %941 = vst.msk [vmem:[%s1464_s15 + $0x2c8] sm:$0xff] %vm851_vm0, %v774_v25 }
 0x19c   : > { %v778_v26 = vpop.xlane.xlu1 %777  ;;  %v776_v27 = vpop.xlane.xlu0 %775 }
 0x19d   : > { %943 = vst.msk [vmem:[%s1464_s15 + $0x2d8] sm:$0xff] %vm851_vm0, %v778_v26 }
 0x19e   : > { %v780_v28 = vpop.xlane.xlu2 %779  ;;  %942 = vst.msk [vmem:[%s1464_s15 + $0x2d0] sm:$0xff] %vm851_vm0, %v776_v27 }
 0x19f   : > { %944 = vst.msk [vmem:[%s1464_s15 + $0x2e0] sm:$0xff] %vm851_vm0, %v780_v28 }
 0x1a4   : > { %v784_v29 = vpop.xlane.xlu1 %783  ;;  %v782_v30 = vpop.xlane.xlu0 %781 }
 0x1a5   : > { %946 = vst.msk [vmem:[%s1464_s15 + $0x2f0] sm:$0xff] %vm851_vm0, %v784_v29 }
 0x1a6   : > { %v786_v31 = vpop.xlane.xlu2 %785  ;;  %945 = vst.msk [vmem:[%s1464_s15 + $0x2e8] sm:$0xff] %vm851_vm0, %v782_v30 }
 0x1a7   : > { %947 = vst.msk [vmem:[%s1464_s15 + $0x2f8] sm:$0xff] %vm851_vm0, %v786_v31 }
 0x1ac   : > { %v790_v32 = vpop.xlane.xlu1 %789  ;;  %v788_v33 = vpop.xlane.xlu0 %787 }
 0x1ad   : > { %949 = vst.msk [vmem:[%s1464_s15 + $0x308] sm:$0xff] %vm851_vm0, %v790_v32 }
 0x1ae   : > { %v792_v34 = vpop.xlane.xlu2 %791  ;;  %948 = vst.msk [vmem:[%s1464_s15 + $0x300] sm:$0xff] %vm851_vm0, %v788_v33 }
 0x1af   : > { %950 = vst.msk [vmem:[%s1464_s15 + $0x310] sm:$0xff] %vm851_vm0, %v792_v34 }
 0x1b4   : > { %v796_v35 = vpop.xlane.xlu1 %795  ;;  %v794_v36 = vpop.xlane.xlu0 %793 }
 0x1b5   : > { %952 = vst.msk [vmem:[%s1464_s15 + $0x320] sm:$0xff] %vm851_vm0, %v796_v35 }
 0x1b6   : > { %v798_v37 = vpop.xlane.xlu2 %797  ;;  %951 = vst.msk [vmem:[%s1464_s15 + $0x318] sm:$0xff] %vm851_vm0, %v794_v36 }
 0x1b7   : > { %953 = vst.msk [vmem:[%s1464_s15 + $0x328] sm:$0xff] %vm851_vm0, %v798_v37 }
 0x1bc   : > { %v802_v38 = vpop.xlane.xlu1 %801  ;;  %v800_v39 = vpop.xlane.xlu0 %799 }
 0x1bd   : > { %955 = vst.msk [vmem:[%s1464_s15 + $0x338] sm:$0xff] %vm851_vm0, %v802_v38 }
 0x1be   : > { %v804_v40 = vpop.xlane.xlu2 %803  ;;  %954 = vst.msk [vmem:[%s1464_s15 + $0x330] sm:$0xff] %vm851_vm0, %v800_v39 }
 0x1bf   : > { %956 = vst.msk [vmem:[%s1464_s15 + $0x340] sm:$0xff] %vm851_vm0, %v804_v40 }
 0x1c4   : > { %v808_v41 = vpop.xlane.xlu1 %807  ;;  %v806_v42 = vpop.xlane.xlu0 %805 }
 0x1c5   : > { %958 = vst.msk [vmem:[%s1464_s15 + $0x350] sm:$0xff] %vm851_vm0, %v808_v41 }
 0x1c6   : > { %v810_v43 = vpop.xlane.xlu2 %809  ;;  %957 = vst.msk [vmem:[%s1464_s15 + $0x348] sm:$0xff] %vm851_vm0, %v806_v42 }
 0x1c7   : > { %959 = vst.msk [vmem:[%s1464_s15 + $0x358] sm:$0xff] %vm851_vm0, %v810_v43 }
 0x1cc   : > { %v814_v44 = vpop.xlane.xlu1 %813  ;;  %v812_v45 = vpop.xlane.xlu0 %811 }
 0x1cd   : > { %961 = vst.msk [vmem:[%s1464_s15 + $0x368] sm:$0xff] %vm851_vm0, %v814_v44 }
 0x1ce   : > { %v816_v46 = vpop.xlane.xlu2 %815  ;;  %960 = vst.msk [vmem:[%s1464_s15 + $0x360] sm:$0xff] %vm851_vm0, %v812_v45 }
 0x1cf   : > { %962 = vst.msk [vmem:[%s1464_s15 + $0x370] sm:$0xff] %vm851_vm0, %v816_v46 }
 0x1d4   : > { %v820_v47 = vpop.xlane.xlu1 %819  ;;  %v818_v48 = vpop.xlane.xlu0 %817 }
 0x1d5   : > { %964 = vst.msk [vmem:[%s1464_s15 + $0x380] sm:$0xff] %vm851_vm0, %v820_v47 }
 0x1d6   : > { %v822_v49 = vpop.xlane.xlu2 %821  ;;  %963 = vst.msk [vmem:[%s1464_s15 + $0x378] sm:$0xff] %vm851_vm0, %v818_v48 }
 0x1d7   : > { %965 = vst.msk [vmem:[%s1464_s15 + $0x388] sm:$0xff] %vm851_vm0, %v822_v49 }
 0x1dc   : > { %v826_v50 = vpop.xlane.xlu1 %825  ;;  %v824_v51 = vpop.xlane.xlu0 %823 }
 0x1dd   : > { %967 = vst.msk [vmem:[%s1464_s15 + $0x398] sm:$0xff] %vm851_vm0, %v826_v50 }
 0x1de   : > { %v828_v52 = vpop.xlane.xlu2 %827  ;;  %966 = vst.msk [vmem:[%s1464_s15 + $0x390] sm:$0xff] %vm851_vm0, %v824_v51 }
 0x1df   : > { %968 = vst.msk [vmem:[%s1464_s15 + $0x3a0] sm:$0xff] %vm851_vm0, %v828_v52 }
 0x1e4   : > { %v832_v53 = vpop.xlane.xlu1 %831  ;;  %v830_v54 = vpop.xlane.xlu0 %829 }
 0x1e5   : > { %970 = vst.msk [vmem:[%s1464_s15 + $0x3b0] sm:$0xff] %vm851_vm0, %v832_v53 }
 0x1e6   : > { %v834_v55 = vpop.xlane.xlu2 %833  ;;  %969 = vst.msk [vmem:[%s1464_s15 + $0x3a8] sm:$0xff] %vm851_vm0, %v830_v54 }
 0x1e7   : > { %971 = vst.msk [vmem:[%s1464_s15 + $0x3b8] sm:$0xff] %vm851_vm0, %v834_v55 }
 0x1ec   : > { %v838_v56 = vpop.xlane.xlu1 %837  ;;  %v836_v57 = vpop.xlane.xlu0 %835 }
 0x1ed   : > { %973 = vst.msk [vmem:[%s1464_s15 + $0x3c8] sm:$0xff] %vm851_vm0, %v838_v56 }
 0x1ee   : > { %v840_v58 = vpop.xlane.xlu2 %839  ;;  %972 = vst.msk [vmem:[%s1464_s15 + $0x3c0] sm:$0xff] %vm851_vm0, %v836_v57 }
 0x1ef   : > { %974 = vst.msk [vmem:[%s1464_s15 + $0x3d0] sm:$0xff] %vm851_vm0, %v840_v58 }
 0x1f4   : > { %v844_v59 = vpop.xlane.xlu1 %843  ;;  %v842_v60 = vpop.xlane.xlu0 %841 }
 0x1f5   : > { %976 = vst.msk [vmem:[%s1464_s15 + $0x3e0] sm:$0xff] %vm851_vm0, %v844_v59 }
 0x1f6   : > { %v846_v61 = vpop.xlane.xlu2 %845  ;;  %975 = vst.msk [vmem:[%s1464_s15 + $0x3d8] sm:$0xff] %vm851_vm0, %v842_v60 }
 0x1f7   : > { %977 = vst.msk [vmem:[%s1464_s15 + $0x3e8] sm:$0xff] %vm851_vm0, %v846_v61 }
 0x1fc   : > { %v850_v62 = vpop.xlane.xlu1 %849  ;;  %v848_v63 = vpop.xlane.xlu0 %847 }
 0x1fd   : > { %979 = vst.msk [vmem:[%s1464_s15 + $0x3f8] sm:$0xff] %vm851_vm0, %v850_v62 }
 0x1fe   : > { %978 = vst.msk [vmem:[%s1464_s15 + $0x3f0] sm:$0xff] %vm851_vm0, %v848_v63 }
 0x1ff PF: > { %p15_p8 = scmp.ge.s32.totalorder %s1272_s14, 4   ;;  %s1908_s9 = smov %s1225_s10 }
 0x200   : > { %s1909_s10 = smov %s1229_s11  ;;  %s1910_s11 = smov %s1282_s17 }
 0x201   : > { %s1911_s12 = smov %s1272_s14  ;;  %17 = sbr.rel (!%p15_p8) target bundleno = 5 (0x5), region = 81 }
 0x206   :  { %1002 = vsyncpa [#allocation3], 1 }
 0x207   :  { %1004 = vsyncpa [#allocation3 + $0x1], 1 }
 0x208   :  { %1005 = vsyncpa [#allocation5], 1 }
 0x209   :  { %1007 = vsyncpa [#allocation5 + $0x1], 1 }

</bundles_post_ra>
